<compile_context>
chip_gen: v6e
topology: v6e:2x2x1
jax: 0.10.0
libtpu: 0.0.40
codegen_flags: <defaults>
</compile_context>

<pallas_src>
import functools

import jax
import jax.numpy as jnp
from jax.experimental import pallas as pl
from jax.experimental.pallas import tpu as pltpu


def _round_up(x, m):
    return ((x + m - 1) // m) * m


def _cdiv(a, b):
    return -(-a // b)


# ---------------------------------------------------------------------------
# Kernel 1: streamed fc1 partial pre-activation.
#   partial[p] = x_flat[:, rows(p)] @ w1x[rows(p), :]      (f32 accumulation)
# Grid: (num_par "parallel", nk "arbitrary"); output block index depends only
# on p, so it stays resident across the K reduction (accumulator pattern).
# ---------------------------------------------------------------------------
def _fc1_stream_kernel(x_ref, w1x_ref, part_ref):
    j = pl.program_id(1)

    @pl.when(j == 0)
    def _():
        part_ref[...] = jnp.zeros_like(part_ref)

    part_ref[0] += jnp.dot(x_ref[...], w1x_ref[...],
                           preferred_element_type=jnp.float32)


# ---------------------------------------------------------------------------
# Kernel 2: tiny fused epilogue (everything resident, single invocation).
#   h   = relu(sum_p partial[p] + y_soft @ w1_y + b1)
#   out = h @ [w_mu | w_logvar]  + [b_mu | b_logvar]     (padded to 128 lanes)
# ---------------------------------------------------------------------------
def _head_kernel(part_ref, y_ref, w1y_ref, b1_ref, wh_ref, bh_ref, out_ref):
    pre = part_ref[0]
    for p in range(1, part_ref.shape[0]):          # static, tiny (num_par)
        pre = pre + part_ref[p]
    pre = pre + jnp.dot(y_ref[...], w1y_ref[...],
                        preferred_element_type=jnp.float32) + b1_ref[...]
    h = jnp.maximum(pre, 0.0).astype(jnp.bfloat16)
    out_ref[...] = (jnp.dot(h, wh_ref[...], preferred_element_type=jnp.float32)
                    + bh_ref[...])


# ---------------------------------------------------------------------------
# One-time parameter preparation (NO per-call work on the big weight).
# ---------------------------------------------------------------------------
def prepare_params(params, num_classes, *, block_k=4096, num_par=2):
    w1 = params["w1"]                               # (D_x + NC, 400), (in, out)
    d_in, hd = int(w1.shape[0]), int(w1.shape[1])
    d_x = d_in - num_classes

    block_k = _round_up(max(int(block_k), 128), 128)
    tk = min(block_k, _round_up(max(_cdiv(d_x, num_par), 1), 128))
    nk = _cdiv(d_x, num_par * tk)
    d_pad = num_par * nk * tk

    w1x = w1[:d_x].astype(jnp.bfloat16)
    if d_pad != d_x:                                # zero rows -> contribute 0
        w1x = jnp.pad(w1x, ((0, d_pad - d_x), (0, 0)))

    latent = int(params["b_mu"].shape[1])
    l2 = 2 * latent
    l2p = _round_up(l2, 128)                        # lane-dense head output
    wh = jnp.concatenate([params["w_mu"], params["w_logvar"]],
                         axis=1).astype(jnp.bfloat16)
    bh = jnp.concatenate([params["b_mu"], params["b_logvar"]],
                         axis=1).astype(jnp.float32)
    if l2p != l2:
        wh = jnp.pad(wh, ((0, 0), (0, l2p - l2)))
        bh = jnp.pad(bh, ((0, 0), (0, l2p - l2)))

    return {
        "w1x": w1x,                                 # (d_pad, 400) bf16
        "w1y": w1[d_x:].astype(jnp.bfloat16),       # (NC, 400)    bf16
        "b1": params["b1"].astype(jnp.float32),     # (1, 400)     f32
        "wh": wh,                                   # (400, l2p)   bf16
        "bh": bh,                                   # (1, l2p)     f32
        # static tiling metadata (plain Python ints; passed as static args)
        "tk": int(tk),
        "num_par": int(num_par),
        "latent_dim": latent,
    }


# ---------------------------------------------------------------------------
# Forward
# ---------------------------------------------------------------------------
@functools.partial(jax.jit, static_argnames=("tk", "num_par", "latent_dim"))
def _forward_impl(x, y_soft, w1x, w1y, b1, wh, bh, *, tk, num_par, latent_dim):
    B = x.shape[0]
    x_flat = x.reshape(B, -1).astype(jnp.bfloat16)  # torch .view(x.size(0), -1)
    d_x = x_flat.shape[1]
    d_pad, hd = w1x.shape
    nc = w1y.shape[0]
    l2p = wh.shape[1]
    nk = d_pad // (num_par * tk)

    if d_pad != d_x:                                # tiny (B, pad) zero pad only
        x_flat = jnp.pad(x_flat, ((0, 0), (0, d_pad - d_x)))
    y_bf = y_soft.astype(jnp.bfloat16)

    # Deeper buffering only pays off when the K loop is long enough.
    w1_buf = 3 if nk >= 3 else 2

    # VMEM budget derived from the actual footprint (+ compiler headroom).
    vmem_est = (w1_buf * tk * hd * 2                # streamed w1 slabs (bf16)
                + w1_buf * 16 * tk * 2              # streamed x chunks (sublane-padded)
                + 2 * B * hd * 4                    # partial output block
                + (8 << 20))
    vmem_limit = int(min(64 << 20, max(16 << 20, vmem_est)))

    cost = pl.CostEstimate(
        flops=2 * B * d_pad * hd,
        transcendentals=0,
        bytes_accessed=int(d_pad * hd * 2 + B * d_pad * 2
                           + num_par * B * hd * 4),
    )

    partial = pl.pallas_call(
        _fc1_stream_kernel,
        out_shape=jax.ShapeDtypeStruct((num_par, B, hd), jnp.float32),
        grid_spec=pltpu.PrefetchScalarGridSpec(
            num_scalar_prefetch=0,
            grid=(num_par, nk),
            in_specs=[
                # streamed x chunk (small; rides the same pipeline)
                pl.BlockSpec((B, tk), lambda p, j: (0, p * nk + j),
                             pipeline_mode=pl.Buffered(w1_buf)),
                # streamed fc1 weight slab (dominant HBM traffic)
                pl.BlockSpec((tk, hd), lambda p, j: (p * nk + j, 0),
                             pipeline_mode=pl.Buffered(w1_buf)),
            ],
            out_specs=pl.BlockSpec((1, B, hd), lambda p, j: (p, 0, 0)),
        ),
        compiler_params=pltpu.CompilerParams(
            dimension_semantics=("parallel", "arbitrary"),
            vmem_limit_bytes=vmem_limit,
        ),
        cost_estimate=cost,
    )(x_flat, w1x)

    out = pl.pallas_call(
        _head_kernel,
        out_shape=jax.ShapeDtypeStruct((B, l2p), jnp.float32),
        grid=(1,),
        in_specs=[
            pl.BlockSpec((num_par, B, hd), lambda i: (0, 0, 0)),
            pl.BlockSpec((B, nc), lambda i: (0, 0)),
            pl.BlockSpec((nc, hd), lambda i: (0, 0)),
            pl.BlockSpec((1, hd), lambda i: (0, 0)),
            pl.BlockSpec((hd, l2p), lambda i: (0, 0)),
            pl.BlockSpec((1, l2p), lambda i: (0, 0)),
        ],
        out_specs=pl.BlockSpec((B, l2p), lambda i: (0, 0)),
    )(partial, y_bf, w1y, b1, wh, bh)

    mu = out[:, :latent_dim]
    logvar = out[:, latent_dim:2 * latent_dim]
    return mu, logvar


def res_encoder_forward(x, y_soft, prepped):
    """x: (B, C, H, W) f32 NCHW, y_soft: (B, num_classes) f32 -> (mu, logvar)."""
    return _forward_impl(
        x, y_soft, prepped["w1x"], prepped["w1y"], prepped["b1"],
        prepped["wh"], prepped["bh"],
        tk=prepped["tk"], num_par=prepped["num_par"],
        latent_dim=prepped["latent_dim"])


def init_params(key, input_dim, latent_dim, num_classes, hidden=400):
    """Deterministic synthetic init (uniform, torch Linear default scale)."""
    ks = jax.random.split(key, 6)
    d_in = input_dim + num_classes

    def lin(kw, kb, fan_in, fan_out):
        bound = 1.0 / jnp.sqrt(fan_in)
        w = jax.random.uniform(kw, (fan_in, fan_out), jnp.float32, -bound, bound)
        b = jax.random.uniform(kb, (1, fan_out), jnp.float32, -bound, bound)
        return w, b

    w1, b1 = lin(ks[0], ks[1], d_in, hidden)
    wmu, bmu = lin(ks[2], ks[3], hidden, latent_dim)
    wlv, blv = lin(ks[4], ks[5], hidden, latent_dim)
    return {"w1": w1, "b1": b1, "w_mu": wmu, "b_mu": bmu,
            "w_logvar": wlv, "b_logvar": blv}


if __name__ == "__main__":
    key = jax.random.PRNGKey(0)
    k_x, k_y, k_p = jax.random.split(key, 3)

    # Small shapes consistent with the module: NCHW image + soft labels.
    B, C, Hs, Ws = 2, 4, 16, 16
    num_classes = 10
    latent_dim = 8
    input_dim = C * Hs * Ws

    x = jax.random.normal(k_x, (B, C, Hs, Ws), dtype=jnp.float32)
    logits = jax.random.normal(k_y, (B, num_classes), dtype=jnp.float32)
    y_soft = jax.nn.softmax(logits, axis=-1)

    params = init_params(k_p, input_dim, latent_dim, num_classes)
    prepped = prepare_params(params, num_classes)

    mu, logvar = res_encoder_forward(x, y_soft, prepped)
    jax.block_until_ready((mu, logvar))

    # Pure-JAX reference with the same bf16 weight/activation precision.
    x_cat = jnp.concatenate([x.reshape(B, -1), y_soft],
                            axis=1).astype(jnp.bfloat16)
    h_ref = jnp.maximum(
        jnp.dot(x_cat, params["w1"].astype(jnp.bfloat16),
                preferred_element_type=jnp.float32) + params["b1"], 0.0)
    h_bf = h_ref.astype(jnp.bfloat16)
    mu_ref = jnp.dot(h_bf, params["w_mu"].astype(jnp.bfloat16),
                     preferred_element_type=jnp.float32) + params["b_mu"]
    lv_ref = jnp.dot(h_bf, params["w_logvar"].astype(jnp.bfloat16),
                     preferred_element_type=jnp.float32) + params["b_logvar"]
    assert mu.shape == (B, latent_dim) and logvar.shape == (B, latent_dim)
    assert jnp.allclose(mu, mu_ref, atol=2e-3, rtol=2e-3), "mu mismatch"
    assert jnp.allclose(logvar, lv_ref, atol=2e-3, rtol=2e-3), "logvar mismatch"

    print("KERNEL_OK")
</pallas_src>

<mosaic_0001>
module attributes {stable_mosaic.version = 11 : i64} {
  func.func @_fc1_stream_kernel(%arg0: i32, %arg1: i32, %arg2: memref<2x512xbf16, #tpu.memory_space<vmem>>, %arg3: memref<512x400xbf16, #tpu.memory_space<vmem>>, %arg4: memref<1x2x400xf32, #tpu.memory_space<vmem>>) attributes {dimension_semantics = [#tpu.dimension_semantics<parallel>, #tpu.dimension_semantics<arbitrary>], iteration_bounds = array<i64: 2, 1>, scalar_prefetch = 0 : i64, scratch_operands = 0 : i64, tpu.core_type = #tpu.core_type<tc>, window_params = [{pipeline_mode = #tpu.pipeline_mode<double_buffered>, transform_indices = @transform_0, window_bounds = array<i64: 2, 512>}, {pipeline_mode = #tpu.pipeline_mode<double_buffered>, transform_indices = @transform_1, window_bounds = array<i64: 512, 400>}, {transform_indices = @transform_2, window_bounds = array<i64: 1, 2, 400>}]} {
    %c0_i32 = arith.constant 0 : i32
    %0 = arith.cmpi eq, %arg1, %c0_i32 : i32
    %1 = arith.extui %0 : i1 to i32
    %c0_i32_0 = arith.constant 0 : i32
    %2 = arith.cmpi ne, %1, %c0_i32_0 : i32
    scf.if %2 {
      %cst_10 = arith.constant 0.000000e+00 : f32
      %12 = vector.broadcast %cst_10 : f32 to vector<1x2x400xf32>
      %c0_11 = arith.constant 0 : index
      %c0_12 = arith.constant 0 : index
      %c0_13 = arith.constant 0 : index
      %13 = vector.load %arg4[%c0_11, %c0_12, %c0_13] : memref<1x2x400xf32, #tpu.memory_space<vmem>>, vector<1x2x400xf32>
      tpu.vector_store %arg4[%c0_11, %c0_12, %c0_13], %12 {strides = array<i32>} : memref<1x2x400xf32, #tpu.memory_space<vmem>>, vector<1x2x400xf32>,
    } else {
    }
    %c0 = arith.constant 0 : index
    %c0_1 = arith.constant 0 : index
    %c0_2 = arith.constant 0 : index
    %3 = vector.load %arg4[%c0, %c0_1, %c0_2] : memref<1x2x400xf32, #tpu.memory_space<vmem>>, vector<1x2x400xf32>
    %4 = vector.shape_cast %3 : vector<1x2x400xf32> to vector<2x400xf32>
    %c0_3 = arith.constant 0 : index
    %c0_4 = arith.constant 0 : index
    %5 = vector.load %arg2[%c0_3, %c0_4] : memref<2x512xbf16, #tpu.memory_space<vmem>>, vector<2x512xbf16>
    %c0_5 = arith.constant 0 : index
    %c0_6 = arith.constant 0 : index
    %6 = vector.load %arg3[%c0_5, %c0_6] : memref<512x400xbf16, #tpu.memory_space<vmem>>, vector<512x400xbf16>
    %cst = arith.constant dense<0.000000e+00> : vector<2x400xf32>
    %7 = tpu.matmul %5, %6, %cst {dimension_numbers = #tpu.dot_dimension_numbers<[1], [0], [0], [1], [0, 0, 1, 1], [], []>} : vector<2x512xbf16>, vector<512x400xbf16>, vector<2x400xf32> -> vector<2x400xf32>
    %8 = arith.addf %4, %7 : vector<2x400xf32>
    %c0_7 = arith.constant 0 : index
    %c0_8 = arith.constant 0 : index
    %c0_9 = arith.constant 0 : index
    %9 = vector.load %arg4[%c0_7, %c0_8, %c0_9] : memref<1x2x400xf32, #tpu.memory_space<vmem>>, vector<1x2x400xf32>
    %10 = vector.shape_cast %9 : vector<1x2x400xf32> to vector<2x400xf32>
    %11 = vector.shape_cast %8 : vector<2x400xf32> to vector<1x2x400xf32>
    tpu.vector_store %arg4[%c0_7, %c0_8, %c0_9], %11 {strides = array<i32>} : memref<1x2x400xf32, #tpu.memory_space<vmem>>, vector<1x2x400xf32>,
    return
  }
  func.func @transform_0(%arg0: i32, %arg1: i32) -> (i32, i32) {
    %c1_i32 = arith.constant 1 : i32
    %0 = arith.muli %arg0, %c1_i32 : i32
    %1 = arith.addi %0, %arg1 : i32
    %c0_i32 = arith.constant 0 : i32
    %c0_i32_0 = arith.constant 0 : i32
    return %c0_i32, %1 : i32, i32
  }
  func.func @transform_1(%arg0: i32, %arg1: i32) -> (i32, i32) {
    %c1_i32 = arith.constant 1 : i32
    %0 = arith.muli %arg0, %c1_i32 : i32
    %1 = arith.addi %0, %arg1 : i32
    %c0_i32 = arith.constant 0 : i32
    %c0_i32_0 = arith.constant 0 : i32
    return %1, %c0_i32 : i32, i32
  }
  func.func @transform_2(%arg0: i32, %arg1: i32) -> (i32, i32, i32) {
    %c0_i32 = arith.constant 0 : i32
    %c0_i32_0 = arith.constant 0 : i32
    %c0_i32_1 = arith.constant 0 : i32
    return %arg0, %c0_i32, %c0_i32_0 : i32, i32, i32
  }
}

module attributes {stable_mosaic.version = 11 : i64} {
  func.func @_head_kernel(%arg0: i32, %arg1: memref<2x2x400xf32, #tpu.memory_space<vmem>>, %arg2: memref<2x10xbf16, #tpu.memory_space<vmem>>, %arg3: memref<10x400xbf16, #tpu.memory_space<vmem>>, %arg4: memref<1x400xf32, #tpu.memory_space<vmem>>, %arg5: memref<400x128xbf16, #tpu.memory_space<vmem>>, %arg6: memref<1x128xf32, #tpu.memory_space<vmem>>, %arg7: memref<2x128xf32, #tpu.memory_space<vmem>>) attributes {dimension_semantics = [#tpu.dimension_semantics<arbitrary>], iteration_bounds = array<i64: 1>, scalar_prefetch = 0 : i64, scratch_operands = 0 : i64, tpu.core_type = #tpu.core_type<tc>, window_params = [{pipeline_mode = #tpu.pipeline_mode<synchronous>, transform_indices = @transform_0, window_bounds = array<i64: 2, 2, 400>}, {pipeline_mode = #tpu.pipeline_mode<synchronous>, transform_indices = @transform_1, window_bounds = array<i64: 2, 10>}, {pipeline_mode = #tpu.pipeline_mode<synchronous>, transform_indices = @transform_2, window_bounds = array<i64: 10, 400>}, {pipeline_mode = #tpu.pipeline_mode<synchronous>, transform_indices = @transform_3, window_bounds = array<i64: 1, 400>}, {pipeline_mode = #tpu.pipeline_mode<synchronous>, transform_indices = @transform_4, window_bounds = array<i64: 400, 128>}, {pipeline_mode = #tpu.pipeline_mode<synchronous>, transform_indices = @transform_5, window_bounds = array<i64: 1, 128>}, {pipeline_mode = #tpu.pipeline_mode<synchronous>, transform_indices = @transform_6, window_bounds = array<i64: 2, 128>}]} {
    %c0 = arith.constant 0 : index
    %c0_0 = arith.constant 0 : index
    %c0_1 = arith.constant 0 : index
    %0 = vector.load %arg1[%c0, %c0_0, %c0_1] : memref<2x2x400xf32, #tpu.memory_space<vmem>>, vector<1x2x400xf32>
    %1 = vector.shape_cast %0 : vector<1x2x400xf32> to vector<2x400xf32>
    %c1 = arith.constant 1 : index
    %c0_2 = arith.constant 0 : index
    %c0_3 = arith.constant 0 : index
    %2 = vector.load %arg1[%c1, %c0_2, %c0_3] : memref<2x2x400xf32, #tpu.memory_space<vmem>>, vector<1x2x400xf32>
    %3 = vector.shape_cast %2 : vector<1x2x400xf32> to vector<2x400xf32>
    %4 = arith.addf %1, %3 : vector<2x400xf32>
    %c0_4 = arith.constant 0 : index
    %c0_5 = arith.constant 0 : index
    %5 = vector.load %arg2[%c0_4, %c0_5] : memref<2x10xbf16, #tpu.memory_space<vmem>>, vector<2x10xbf16>
    %c0_6 = arith.constant 0 : index
    %c0_7 = arith.constant 0 : index
    %6 = vector.load %arg3[%c0_6, %c0_7] : memref<10x400xbf16, #tpu.memory_space<vmem>>, vector<10x400xbf16>
    %cst = arith.constant dense<0.000000e+00> : vector<2x400xf32>
    %7 = tpu.matmul %5, %6, %cst {dimension_numbers = #tpu.dot_dimension_numbers<[1], [0], [0], [1], [0, 0, 1, 1], [], []>} : vector<2x10xbf16>, vector<10x400xbf16>, vector<2x400xf32> -> vector<2x400xf32>
    %8 = arith.addf %4, %7 : vector<2x400xf32>
    %c0_8 = arith.constant 0 : index
    %c0_9 = arith.constant 0 : index
    %9 = vector.load %arg4[%c0_8, %c0_9] : memref<1x400xf32, #tpu.memory_space<vmem>>, vector<1x400xf32>
    %10 = vector.broadcast %9 : vector<1x400xf32> to vector<2x400xf32>
    %11 = arith.addf %8, %10 : vector<2x400xf32>
    %cst_10 = arith.constant 0.000000e+00 : f32
    %12 = vector.broadcast %cst_10 : f32 to vector<2x400xf32>
    %13 = arith.maximumf %11, %12 : vector<2x400xf32>
    %14 = arith.truncf %13 : vector<2x400xf32> to vector<2x400xbf16>
    %c0_11 = arith.constant 0 : index
    %c0_12 = arith.constant 0 : index
    %15 = vector.load %arg5[%c0_11, %c0_12] : memref<400x128xbf16, #tpu.memory_space<vmem>>, vector<400x128xbf16>
    %cst_13 = arith.constant dense<0.000000e+00> : vector<2x128xf32>
    %16 = tpu.matmul %14, %15, %cst_13 {dimension_numbers = #tpu.dot_dimension_numbers<[1], [0], [0], [1], [0, 0, 1, 1], [], []>} : vector<2x400xbf16>, vector<400x128xbf16>, vector<2x128xf32> -> vector<2x128xf32>
    %c0_14 = arith.constant 0 : index
    %c0_15 = arith.constant 0 : index
    %17 = vector.load %arg6[%c0_14, %c0_15] : memref<1x128xf32, #tpu.memory_space<vmem>>, vector<1x128xf32>
    %18 = vector.broadcast %17 : vector<1x128xf32> to vector<2x128xf32>
    %19 = arith.addf %16, %18 : vector<2x128xf32>
    %c0_16 = arith.constant 0 : index
    %c0_17 = arith.constant 0 : index
    %20 = vector.load %arg7[%c0_16, %c0_17] : memref<2x128xf32, #tpu.memory_space<vmem>>, vector<2x128xf32>
    tpu.vector_store %arg7[%c0_16, %c0_17], %19 {strides = array<i32>} : memref<2x128xf32, #tpu.memory_space<vmem>>, vector<2x128xf32>,
    return
  }
  func.func @transform_0(%arg0: i32) -> (i32, i32, i32) {
    %c0_i32 = arith.constant 0 : i32
    %c0_i32_0 = arith.constant 0 : i32
    %c0_i32_1 = arith.constant 0 : i32
    %c0_i32_2 = arith.constant 0 : i32
    return %c0_i32, %c0_i32_0, %c0_i32_1 : i32, i32, i32
  }
  func.func @transform_1(%arg0: i32) -> (i32, i32) {
    %c0_i32 = arith.constant 0 : i32
    %c0_i32_0 = arith.constant 0 : i32
    %c0_i32_1 = arith.constant 0 : i32
    return %c0_i32, %c0_i32_0 : i32, i32
  }
  func.func @transform_2(%arg0: i32) -> (i32, i32) {
    %c0_i32 = arith.constant 0 : i32
    %c0_i32_0 = arith.constant 0 : i32
    %c0_i32_1 = arith.constant 0 : i32
    return %c0_i32, %c0_i32_0 : i32, i32
  }
  func.func @transform_3(%arg0: i32) -> (i32, i32) {
    %c0_i32 = arith.constant 0 : i32
    %c0_i32_0 = arith.constant 0 : i32
    %c0_i32_1 = arith.constant 0 : i32
    return %c0_i32, %c0_i32_0 : i32, i32
  }
  func.func @transform_4(%arg0: i32) -> (i32, i32) {
    %c0_i32 = arith.constant 0 : i32
    %c0_i32_0 = arith.constant 0 : i32
    %c0_i32_1 = arith.constant 0 : i32
    return %c0_i32, %c0_i32_0 : i32, i32
  }
  func.func @transform_5(%arg0: i32) -> (i32, i32) {
    %c0_i32 = arith.constant 0 : i32
    %c0_i32_0 = arith.constant 0 : i32
    %c0_i32_1 = arith.constant 0 : i32
    return %c0_i32, %c0_i32_0 : i32, i32
  }
  func.func @transform_6(%arg0: i32) -> (i32, i32) {
    %c0_i32 = arith.constant 0 : i32
    %c0_i32_0 = arith.constant 0 : i32
    %c0_i32_1 = arith.constant 0 : i32
    return %c0_i32, %c0_i32_0 : i32, i32
  }
}

</mosaic_0001>

<bundles_post_ra>
// kernel: _forward_impl.2
= control target key start
LH: loop header
LB: loop body
LE: loop exit
PB: predicated region body
PF: predicated region fallthrough
CT: control target
= control target key end

     0   :  { %s1677_s9 = smov 0   ;;  %s1679_s10 = smov 0   ;;  %s1876_s0 = inlined_call_operand.vmem [shape: bf16[2,1024], index: 0, kind: input, shape index: {}]   ;;  %s1877_s1 = inlined_call_operand.vmem [shape: bf16[1024,400], index: 1, kind: input, shape index: {}]   ;;  %s1878_s2 = inlined_call_operand.vmem [shape: f32[2,2,400], index: 2, kind: output, shape index: {}]  }
   0x1   :  { %s1681_s11 = smov 0  }
   0x2 LB: > { %s24_s12 = sadd.s32 1, %s1653_s10  ;;  %p1276_p0 = scmp.ge.s32.totalorder %s1657_s11, 1  ;;  %s1657_s11 = sphi %s1681_s11, %s12_s11   ;;  %s1653_s10 = sphi %s1679_s10, %s1882_s10   ;;  %s1649_s9 = sphi %s1677_s9, %s1881_s9  }
   0x3   : > { %p26_p1 = scmp.ge.s32.totalorder %s24_s12, 2  ;;  %p144_p2 = scmp.lt.s32.totalorder %s1657_s11, 3 }
   0x5   : > { %s1884_s12 = smov (%p26_p1, %s24_s12), 0  ;;  %p145_p3 = pnand %p1276_p0, %p144_p2 }
   0x6   : > { %s1278_s13 = sshll.u32 (!%p145_p3), %s1649_s9, 6  ;;  %s1277_s18 = sshll.u32 (!%p145_p3), %s1649_s9, 2 }
   0x7   : > { %148 = sbr.rel (%p145_p3) target bundleno = 351 (0x15f), region = 28  ;;  %p182_p4 = scmp.lt.s32.totalorder (!%p145_p3), %s1278_s13, 127 }
   0x8   : > { %p175_p5 = scmp.lt.s32.totalorder (!%p145_p3), %s1277_s18, 7  ;;  %p189_p6 = scmp.lt.s32.totalorder (!%p145_p3), %s1649_s9, 1 }
   0xc   : > { %s1886_s13 = smov (!%p182_p4, %s1278_s13), 127  ;;  %v1659_v38 = vmov 1966171168   ;;  %v348_v40 = vlaneseq  ;;  %s1888_s18 = smov (!%p175_p5, %s1277_s18), 7  ;;  %vm198_vm0 = vcmask 1041408   ;;  %vm199_vm1 = vcmask 1043458  }
   0xd   : > { %s1414_s14 = sshll.u32 %s1886_s13, 4  ;;  %v346_v39 = vunpack.c.l.s4 %v1659_v38  ;;  %s177_s21 = scalar_lea.vmem %s1876_s0, %s1888_s18  ;;  %vm200_vm2 = vmor %vm199_vm1, %vm198_vm0  ;;  %vm201_vm3 = vcmask 1045508   ;;  %vm203_vm5 = vcmask 130054  }
   0xe   : > { %s1701_s17 = scalar_lea.vmem %s1877_s1, %s1414_s14  ;;  %v1746_v46 = vshrl.u32 %v348_v40, 7  ;;  %v1283_v52 = vld.sshfl [vmem:[%s177_s21] sm:$0x33 pattern:$0x75316420]  ;;  %s1890_s9 = smov (!%p189_p6, %s1649_s9), 1  ;;  %vm202_vm4 = vmor %vm201_vm3, %vm200_vm2 }
   0xf   : > { %v1443_v0 = vld [vmem:[%s1701_s17 + $0xe4] ss:$16 sps:$4 sm:$0xff]   ;;  %v1447_v2 = vld [vmem:[%s1701_s17 + $0xe0] ss:$16 sps:$4 sm:$0xff]   ;;  %v347_v45 = vunpack.c.0.s8 %v346_v39  ;;  %v344_v55 = vcombine.high %v1283_v52, %v1283_v52  ;;  %v1575_v38 = vld [vmem:[%s1701_s17 + $0x28] ss:$16 sps:$4 sm:$0xff]  }
  0x10   : > { %v1445_v1 = vld [vmem:[%s1701_s17 + $0x2e4] ss:$16 sps:$4 sm:$0xff]   ;;  %1005 = vmatprep.subr.bf16.mxu0 %v1443_v0  ;;  %v1448_v3 = vld [vmem:[%s1701_s17 + $0x2e0] ss:$16 sps:$4 sm:$0xff]   ;;  %v1578_v39 = vld [vmem:[%s1701_s17 + $0x228] ss:$16 sps:$4 sm:$0xff]  }
  0x11   : > { %1046 = vmatprep.subr.bf16.mxu1 %v1445_v1  ;;  %v1449_v4 = vld [vmem:[%s1701_s17 + $0xc4] ss:$16 sps:$4 sm:$0xff]   ;;  %1006 = vmatpush1.bf16.msra.mxu0 %v1447_v2  ;;  %v1453_v6 = vld [vmem:[%s1701_s17 + $0xc0] ss:$16 sps:$4 sm:$0xff]   ;;  %v350_v51 = vsub.s32 %v347_v45, %v1746_v46  ;;  %v1583_v40 = vld [vmem:[%s1701_s17 + $0xc] ss:$16 sps:$4 sm:$0xff]  }
  0x12   : > { %1047 = vmatpush1.bf16.msra.mxu1 %v1448_v3  ;;  %v1451_v5 = vld [vmem:[%s1701_s17 + $0x2c4] ss:$16 sps:$4 sm:$0xff]   ;;  %1007 = vmatprep.subr.bf16.mxu0 %v1449_v4  ;;  %v1454_v7 = vld [vmem:[%s1701_s17 + $0x2c0] ss:$16 sps:$4 sm:$0xff]   ;;  %v1592_v45 = vld [vmem:[%s1701_s17 + $0x3ec] ss:$16 sps:$4 sm:$0xff]  }
  0x13   : > { %1048 = vmatprep.subr.bf16.mxu1 %v1451_v5  ;;  %v1455_v8 = vld [vmem:[%s1701_s17 + $0xa4] ss:$16 sps:$4 sm:$0xff]   ;;  %v1459_v10 = vld [vmem:[%s1701_s17 + $0xa0] ss:$16 sps:$4 sm:$0xff]   ;;  %v358_v58 = vrot.slane %v344_v55, %v350_v51  ;;  %v1599_v55 = vld [vmem:[%s1701_s17 + $0x1a8] ss:$16 sps:$4 sm:$0xff]  }
  0x14   : > { %v1457_v9 = vld [vmem:[%s1701_s17 + $0x2a4] ss:$16 sps:$4 sm:$0xff]   ;;  %v1460_v11 = vld [vmem:[%s1701_s17 + $0x2a0] ss:$16 sps:$4 sm:$0xff]   ;;  %s1415_s22 = sshll.u32 %s1890_s9, 3  ;;  %vm1855_vm6 = vmor %vm203_vm5, %vm202_vm4 }
  0x15   : > { %1008 = vmatpush1.bf16.msra.mxu0 %v1453_v6  ;;  %v1461_v12 = vld [vmem:[%s1701_s17 + $0x84] ss:$16 sps:$4 sm:$0xff]   ;;  %v1465_v14 = vld [vmem:[%s1701_s17 + $0x80] ss:$16 sps:$4 sm:$0xff]   ;;  %v360_v61 = vcombine.high %v358_v58, %v358_v58  ;;  %1037 = vmatprep.mubr.bf16.mxu0 %v358_v58  ;;  %s1853_s25 = scalar_lea.vmem %s1878_s2, %s1415_s22 }
  0x16   : > { %1049 = vmatpush1.bf16.msra.mxu1 %v1454_v7  ;;  %1009 = vmatprep.subr.bf16.mxu0 %v1455_v8  ;;  %v1463_v13 = vld [vmem:[%s1701_s17 + $0x284] ss:$16 sps:$4 sm:$0xff]   ;;  %v1466_v15 = vld [vmem:[%s1701_s17 + $0x280] ss:$16 sps:$4 sm:$0xff]  }
  0x17   : > { %1050 = vmatprep.subr.bf16.mxu1 %v1457_v9  ;;  %v1467_v16 = vld [vmem:[%s1701_s17 + $0x64] ss:$16 sps:$4 sm:$0xff]   ;;  %v1471_v18 = vld [vmem:[%s1701_s17 + $0x60] ss:$16 sps:$4 sm:$0xff]   ;;  %1078 = vmatprep.mubr.bf16.mxu1 %v360_v61  ;;  %v1773_v9 = vrot.slane %v1283_v52, %v350_v51  ;;  %v1593_v51 = vld [vmem:[%s1701_s17 + $0x1c8] ss:$16 sps:$4 sm:$0xff]  }
  0x18   : > { %v1469_v17 = vld [vmem:[%s1701_s17 + $0x264] ss:$16 sps:$4 sm:$0xff]   ;;  %v1472_v19 = vld [vmem:[%s1701_s17 + $0x260] ss:$16 sps:$4 sm:$0xff]   ;;  %v1596_v52 = vld [vmem:[%s1701_s17 + $0x3c8] ss:$16 sps:$4 sm:$0xff]  }
  0x19   : > { %1010 = vmatpush1.bf16.msra.mxu0 %v1459_v10  ;;  %v1473_v20 = vld [vmem:[%s1701_s17 + $0x44] ss:$16 sps:$4 sm:$0xff]   ;;  %v1477_v22 = vld [vmem:[%s1701_s17 + $0x40] ss:$16 sps:$4 sm:$0xff]  }
  0x1a   : > { %1051 = vmatpush1.bf16.msra.mxu1 %v1460_v11  ;;  %1011 = vmatprep.subr.bf16.mxu0 %v1461_v12  ;;  %v1475_v21 = vld [vmem:[%s1701_s17 + $0x244] ss:$16 sps:$4 sm:$0xff]   ;;  %v1478_v23 = vld [vmem:[%s1701_s17 + $0x240] ss:$16 sps:$4 sm:$0xff]   ;;  %v1541_v11 = vld [vmem:[%s1701_s17 + $0xec] ss:$16 sps:$4 sm:$0xff]  }
  0x1b   : > { %1052 = vmatprep.subr.bf16.mxu1 %v1463_v13  ;;  %v1479_v24 = vld [vmem:[%s1701_s17 + $0x24] ss:$16 sps:$4 sm:$0xff]   ;;  %v1483_v26 = vld [vmem:[%s1701_s17 + $0x20] ss:$16 sps:$4 sm:$0xff]   ;;  %v1544_v12 = vld [vmem:[%s1701_s17 + $0x2ec] ss:$16 sps:$4 sm:$0xff]   ;;  %v1780_v13 = vcombine.high %v1773_v9, %v1773_v9 }
  0x1c   : > { %v1481_v25 = vld [vmem:[%s1701_s17 + $0x224] ss:$16 sps:$4 sm:$0xff]   ;;  %v1484_v27 = vld [vmem:[%s1701_s17 + $0x220] ss:$16 sps:$4 sm:$0xff]  }
  0x1d   : > { %1012 = vmatpush1.bf16.msra.mxu0 %v1465_v14  ;;  %v1485_v28 = vld [vmem:[%s1701_s17 + $0x4] ss:$16 sps:$4 sm:$0xff]   ;;  %v1489_v30 = vld [vmem:[%s1701_s17] ss:$16 sps:$4 sm:$0xff]   ;;  %v1539_v14 = vld [vmem:[%s1701_s17 + $0xe8] ss:$16 sps:$4 sm:$0xff]  }
  0x1e   : > { %1053 = vmatpush1.bf16.msra.mxu1 %v1466_v15  ;;  %1013 = vmatprep.subr.bf16.mxu0 %v1467_v16  ;;  %v1487_v29 = vld [vmem:[%s1701_s17 + $0x204] ss:$16 sps:$4 sm:$0xff]   ;;  %v1490_v31 = vld [vmem:[%s1701_s17 + $0x200] ss:$16 sps:$4 sm:$0xff]   ;;  %v1542_v15 = vld [vmem:[%s1701_s17 + $0x2e8] ss:$16 sps:$4 sm:$0xff]  }
  0x1f   : > { %1054 = vmatprep.subr.bf16.mxu1 %v1469_v17  ;;  %v1491_v32 = vld [vmem:[%s1701_s17 + $0x1e4] ss:$16 sps:$4 sm:$0xff]   ;;  %v1495_v34 = vld [vmem:[%s1701_s17 + $0x1e0] ss:$16 sps:$4 sm:$0xff]   ;;  %v1547_v16 = vld [vmem:[%s1701_s17 + $0xcc] ss:$16 sps:$4 sm:$0xff]  }
  0x20   : > { %v1493_v33 = vld [vmem:[%s1701_s17 + $0x3e4] ss:$16 sps:$4 sm:$0xff]   ;;  %v1496_v35 = vld [vmem:[%s1701_s17 + $0x3e0] ss:$16 sps:$4 sm:$0xff]   ;;  %v1550_v17 = vld [vmem:[%s1701_s17 + $0x2cc] ss:$16 sps:$4 sm:$0xff]  }
  0x21   : > { %1014 = vmatpush1.bf16.msra.mxu0 %v1471_v18  ;;  %v1497_v36 = vld [vmem:[%s1701_s17 + $0x1c4] ss:$16 sps:$4 sm:$0xff]   ;;  %v1501_v41 = vld [vmem:[%s1701_s17 + $0x1c0] ss:$16 sps:$4 sm:$0xff]   ;;  %v1545_v18 = vld [vmem:[%s1701_s17 + $0xc8] ss:$16 sps:$4 sm:$0xff]  }
  0x22   : > { %1055 = vmatpush1.bf16.msra.mxu1 %v1472_v19  ;;  %1015 = vmatprep.subr.bf16.mxu0 %v1473_v20  ;;  %v1499_v37 = vld [vmem:[%s1701_s17 + $0x3c4] ss:$16 sps:$4 sm:$0xff]   ;;  %v1502_v42 = vld [vmem:[%s1701_s17 + $0x3c0] ss:$16 sps:$4 sm:$0xff]   ;;  %v1548_v19 = vld [vmem:[%s1701_s17 + $0x2c8] ss:$16 sps:$4 sm:$0xff]  }
  0x23   : > { %1056 = vmatprep.subr.bf16.mxu1 %v1475_v21  ;;  %v1503_v43 = vld [vmem:[%s1701_s17 + $0x1a4] ss:$16 sps:$4 sm:$0xff]   ;;  %v1507_v47 = vld [vmem:[%s1701_s17 + $0x1a0] ss:$16 sps:$4 sm:$0xff]   ;;  %v1553_v20 = vld [vmem:[%s1701_s17 + $0xac] ss:$16 sps:$4 sm:$0xff]  }
  0x24   : > { %v1505_v44 = vld [vmem:[%s1701_s17 + $0x3a4] ss:$16 sps:$4 sm:$0xff]   ;;  %v1508_v48 = vld [vmem:[%s1701_s17 + $0x3a0] ss:$16 sps:$4 sm:$0xff]   ;;  %v1556_v21 = vld [vmem:[%s1701_s17 + $0x2ac] ss:$16 sps:$4 sm:$0xff]  }
  0x25   : > { %1016 = vmatpush1.bf16.msra.mxu0 %v1477_v22  ;;  %v1509_v49 = vld [vmem:[%s1701_s17 + $0x184] ss:$16 sps:$4 sm:$0xff]   ;;  %v1513_v53 = vld [vmem:[%s1701_s17 + $0x180] ss:$16 sps:$4 sm:$0xff]   ;;  %v1551_v22 = vld [vmem:[%s1701_s17 + $0xa8] ss:$16 sps:$4 sm:$0xff]  }
  0x26   : > { %1057 = vmatpush1.bf16.msra.mxu1 %v1478_v23  ;;  %1017 = vmatprep.subr.bf16.mxu0 %v1479_v24  ;;  %v1511_v50 = vld [vmem:[%s1701_s17 + $0x384] ss:$16 sps:$4 sm:$0xff]   ;;  %v1514_v54 = vld [vmem:[%s1701_s17 + $0x380] ss:$16 sps:$4 sm:$0xff]   ;;  %v1554_v23 = vld [vmem:[%s1701_s17 + $0x2a8] ss:$16 sps:$4 sm:$0xff]  }
  0x27   : > { %1058 = vmatprep.subr.bf16.mxu1 %v1481_v25  ;;  %v1515_v56 = vld [vmem:[%s1701_s17 + $0x164] ss:$16 sps:$4 sm:$0xff]   ;;  %v1519_v59 = vld [vmem:[%s1701_s17 + $0x160] ss:$16 sps:$4 sm:$0xff]   ;;  %v1559_v24 = vld [vmem:[%s1701_s17 + $0x8c] ss:$16 sps:$4 sm:$0xff]  }
  0x28   : > { %v1517_v57 = vld [vmem:[%s1701_s17 + $0x364] ss:$16 sps:$4 sm:$0xff]   ;;  %v1520_v60 = vld [vmem:[%s1701_s17 + $0x360] ss:$16 sps:$4 sm:$0xff]   ;;  %v1562_v25 = vld [vmem:[%s1701_s17 + $0x28c] ss:$16 sps:$4 sm:$0xff]  }
  0x29   : > { %1018 = vmatpush1.bf16.msra.mxu0 %v1483_v26  ;;  %v1521_v62 = vld [vmem:[%s1701_s17 + $0x144] ss:$16 sps:$4 sm:$0xff]   ;;  %v1525_v0 = vld [vmem:[%s1701_s17 + $0x140] ss:$16 sps:$4 sm:$0xff]   ;;  %v1557_v26 = vld [vmem:[%s1701_s17 + $0x88] ss:$16 sps:$4 sm:$0xff]  }
  0x2a   : > { %1059 = vmatpush1.bf16.msra.mxu1 %v1484_v27  ;;  %1019 = vmatprep.subr.bf16.mxu0 %v1485_v28  ;;  %v1523_v63 = vld [vmem:[%s1701_s17 + $0x344] ss:$16 sps:$4 sm:$0xff]   ;;  %v1526_v1 = vld [vmem:[%s1701_s17 + $0x340] ss:$16 sps:$4 sm:$0xff]   ;;  %v1560_v27 = vld [vmem:[%s1701_s17 + $0x288] ss:$16 sps:$4 sm:$0xff]  }
  0x2b   : > { %1060 = vmatprep.subr.bf16.mxu1 %v1487_v29  ;;  %v1527_v2 = vld [vmem:[%s1701_s17 + $0x124] ss:$16 sps:$4 sm:$0xff]   ;;  %v1531_v4 = vld [vmem:[%s1701_s17 + $0x120] ss:$16 sps:$4 sm:$0xff]   ;;  %v1565_v28 = vld [vmem:[%s1701_s17 + $0x6c] ss:$16 sps:$4 sm:$0xff]  }
  0x2c   : > { %v1529_v3 = vld [vmem:[%s1701_s17 + $0x324] ss:$16 sps:$4 sm:$0xff]   ;;  %v1532_v5 = vld [vmem:[%s1701_s17 + $0x320] ss:$16 sps:$4 sm:$0xff]   ;;  %v1568_v29 = vld [vmem:[%s1701_s17 + $0x26c] ss:$16 sps:$4 sm:$0xff]  }
  0x2d   : > { %1020 = vmatpush1.bf16.msra.mxu0 %v1489_v30  ;;  %v1533_v6 = vld [vmem:[%s1701_s17 + $0x104] ss:$16 sps:$4 sm:$0xff]   ;;  %v1537_v8 = vld [vmem:[%s1701_s17 + $0x100] ss:$16 sps:$4 sm:$0xff]   ;;  %v1563_v30 = vld [vmem:[%s1701_s17 + $0x68] ss:$16 sps:$4 sm:$0xff]  }
  0x2e   : > { %1061 = vmatpush1.bf16.msra.mxu1 %v1490_v31  ;;  %1021 = vmatprep.subr.bf16.mxu0 %v1491_v32  ;;  %v1535_v7 = vld [vmem:[%s1701_s17 + $0x304] ss:$16 sps:$4 sm:$0xff]   ;;  %v1538_v10 = vld [vmem:[%s1701_s17 + $0x300] ss:$16 sps:$4 sm:$0xff]   ;;  %v1566_v31 = vld [vmem:[%s1701_s17 + $0x268] ss:$16 sps:$4 sm:$0xff]  }
  0x2f   : > { %1062 = vmatprep.subr.bf16.mxu1 %v1493_v33  ;;  %v1571_v32 = vld [vmem:[%s1701_s17 + $0x4c] ss:$16 sps:$4 sm:$0xff]  }
  0x30   : > { %v1574_v33 = vld [vmem:[%s1701_s17 + $0x24c] ss:$16 sps:$4 sm:$0xff]  }
  0x31   : > { %1022 = vmatpush2.bf16.msra.mxu0 %v1495_v34  ;;  %v1569_v34 = vld [vmem:[%s1701_s17 + $0x48] ss:$16 sps:$4 sm:$0xff]  }
  0x32   : > { %1063 = vmatpush2.bf16.msra.mxu1 %v1496_v35  ;;  %1023 = vmatprep.subr.bf16.mxu0 %v1497_v36  ;;  %v1572_v35 = vld [vmem:[%s1701_s17 + $0x248] ss:$16 sps:$4 sm:$0xff]   ;;  %v1577_v36 = vld [vmem:[%s1701_s17 + $0x2c] ss:$16 sps:$4 sm:$0xff]  }
  0x33   : > { %1064 = vmatprep.subr.bf16.mxu1 %v1499_v37  ;;  %v1580_v37 = vld [vmem:[%s1701_s17 + $0x22c] ss:$16 sps:$4 sm:$0xff]  }
  0x35   : > { %1024 = vmatpush2.bf16.msra.mxu0 %v1501_v41  ;;  %v1586_v41 = vld [vmem:[%s1701_s17 + $0x20c] ss:$16 sps:$4 sm:$0xff]  }
  0x36   : > { %1065 = vmatpush2.bf16.msra.mxu1 %v1502_v42  ;;  %1025 = vmatprep.subr.bf16.mxu0 %v1503_v43  ;;  %v1581_v42 = vld [vmem:[%s1701_s17 + $0x8] ss:$16 sps:$4 sm:$0xff]  }
  0x37   : > { %1066 = vmatprep.subr.bf16.mxu1 %v1505_v44  ;;  %v1584_v43 = vld [vmem:[%s1701_s17 + $0x208] ss:$16 sps:$4 sm:$0xff]   ;;  %v1589_v44 = vld [vmem:[%s1701_s17 + $0x1ec] ss:$16 sps:$4 sm:$0xff]  }
  0x39   : > { %1026 = vmatpush2.bf16.msra.mxu0 %v1507_v47  ;;  %v1587_v47 = vld [vmem:[%s1701_s17 + $0x1e8] ss:$16 sps:$4 sm:$0xff]  }
  0x3a   : > { %1067 = vmatpush2.bf16.msra.mxu1 %v1508_v48  ;;  %1027 = vmatprep.subr.bf16.mxu0 %v1509_v49  ;;  %v1590_v48 = vld [vmem:[%s1701_s17 + $0x3e8] ss:$16 sps:$4 sm:$0xff]   ;;  %v1595_v49 = vld [vmem:[%s1701_s17 + $0x1cc] ss:$16 sps:$4 sm:$0xff]  }
  0x3b   : > { %1068 = vmatprep.subr.bf16.mxu1 %v1511_v50  ;;  %v1598_v50 = vld [vmem:[%s1701_s17 + $0x3cc] ss:$16 sps:$4 sm:$0xff]  }
  0x3d   : > { %1028 = vmatpush2.bf16.msra.mxu0 %v1513_v53  ;;  %v1601_v53 = vld [vmem:[%s1701_s17 + $0x1ac] ss:$16 sps:$4 sm:$0xff]  }
  0x3e   : > { %1069 = vmatpush2.bf16.msra.mxu1 %v1514_v54  ;;  %1029 = vmatprep.subr.bf16.mxu0 %v1515_v56  ;;  %v1604_v54 = vld [vmem:[%s1701_s17 + $0x3ac] ss:$16 sps:$4 sm:$0xff]   ;;  %v1602_v56 = vld [vmem:[%s1701_s17 + $0x3a8] ss:$16 sps:$4 sm:$0xff]  }
  0x3f   : > { %1070 = vmatprep.subr.bf16.mxu1 %v1517_v57  ;;  %v1607_v57 = vld [vmem:[%s1701_s17 + $0x18c] ss:$16 sps:$4 sm:$0xff]  }
  0x41   : > { %1030 = vmatpush2.bf16.msra.mxu0 %v1519_v59  ;;  %v1605_v59 = vld [vmem:[%s1701_s17 + $0x188] ss:$16 sps:$4 sm:$0xff]  }
  0x42   : > { %1071 = vmatpush2.bf16.msra.mxu1 %v1520_v60  ;;  %1031 = vmatprep.subr.bf16.mxu0 %v1521_v62  ;;  %v1608_v60 = vld [vmem:[%s1701_s17 + $0x388] ss:$16 sps:$4 sm:$0xff]   ;;  %v1616_v62 = vld [vmem:[%s1701_s17 + $0x36c] ss:$16 sps:$4 sm:$0xff]  }
  0x43   : > { %1072 = vmatprep.subr.bf16.mxu1 %v1523_v63  ;;  %v1611_v63 = vld [vmem:[%s1701_s17 + $0x168] ss:$16 sps:$4 sm:$0xff]  }
  0x45   : > { %1032 = vmatpush2.bf16.msra.mxu0 %v1525_v0  ;;  %v1614_v0 = vld [vmem:[%s1701_s17 + $0x368] ss:$16 sps:$4 sm:$0xff]  }
  0x46   : > { %1073 = vmatpush2.bf16.msra.mxu1 %v1526_v1  ;;  %1033 = vmatprep.subr.bf16.mxu0 %v1527_v2  ;;  %v1619_v1 = vld [vmem:[%s1701_s17 + $0x14c] ss:$16 sps:$4 sm:$0xff]  }
  0x47   : > { %1074 = vmatprep.subr.bf16.mxu1 %v1529_v3  ;;  %v1622_v2 = vld [vmem:[%s1701_s17 + $0x34c] ss:$16 sps:$4 sm:$0xff]   ;;  %v1617_v3 = vld [vmem:[%s1701_s17 + $0x148] ss:$16 sps:$4 sm:$0xff]  }
  0x49   : > { %1034 = vmatpush2.bf16.msra.mxu0 %v1531_v4  ;;  %v1620_v4 = vld [vmem:[%s1701_s17 + $0x348] ss:$16 sps:$4 sm:$0xff]  }
  0x4a   : > { %1075 = vmatpush2.bf16.msra.mxu1 %v1532_v5  ;;  %1035 = vmatprep.subr.bf16.mxu0 %v1533_v6  ;;  %v1625_v5 = vld [vmem:[%s1701_s17 + $0x12c] ss:$16 sps:$4 sm:$0xff]  }
  0x4b   : > { %1076 = vmatprep.subr.bf16.mxu1 %v1535_v7  ;;  %v1628_v6 = vld [vmem:[%s1701_s17 + $0x32c] ss:$16 sps:$4 sm:$0xff]   ;;  %v1623_v7 = vld [vmem:[%s1701_s17 + $0x128] ss:$16 sps:$4 sm:$0xff]  }
  0x4d   : > { %1036 = vmatpush2.bf16.msra.mxu0 %v1537_v8  ;;  %v1626_v8 = vld [vmem:[%s1701_s17 + $0x328] ss:$16 sps:$4 sm:$0xff]  }
  0x4e   : > { %1077 = vmatpush2.bf16.msra.mxu1 %v1538_v10  ;;  %1087 = vmatprep.subr.bf16.mxu0 %v1541_v11  ;;  %v1631_v10 = vld [vmem:[%s1701_s17 + $0x10c] ss:$16 sps:$4 sm:$0xff]  }
  0x4f   : > { %1128 = vmatprep.subr.bf16.mxu1 %v1544_v12  ;;  %v1634_v11 = vld [vmem:[%s1701_s17 + $0x30c] ss:$16 sps:$4 sm:$0xff]   ;;  %v1629_v12 = vld [vmem:[%s1701_s17 + $0x108] ss:$16 sps:$4 sm:$0xff]  }
  0x50   : > { %1038 = vmatmul.mubr.bf16.vlgmr.msra.gmra.mxu0 %v1773_v9 }
  0x51   : > { %1079 = vmatmul.mubr.bf16.vlgmr.msra.gmra.mxu1 %v1780_v13  ;;  %1088 = vmatpush1.bf16.msra.mxu0 %v1539_v14  ;;  %v1632_v14 = vld [vmem:[%s1701_s17 + $0x308] ss:$16 sps:$4 sm:$0xff]  }
  0x52   : > { %1129 = vmatpush1.bf16.msra.mxu1 %v1542_v15  ;;  %1089 = vmatprep.subr.bf16.mxu0 %v1547_v16 }
  0x53   : > { %1130 = vmatprep.subr.bf16.mxu1 %v1550_v17  ;;  %1119 = vmatprep.mubr.bf16.mxu0 %v358_v58  ;;  %v1610_v58 = vld [vmem:[%s1701_s17 + $0x38c] ss:$16 sps:$4 sm:$0xff]  }
  0x54   : > { %1160 = vmatprep.mubr.bf16.mxu1 %v360_v61  ;;  %v1613_v61 = vld [vmem:[%s1701_s17 + $0x16c] ss:$16 sps:$4 sm:$0xff]  }
  0x55   : > { %1090 = vmatpush1.bf16.msra.mxu0 %v1545_v18 }
  0x56   : > { %1131 = vmatpush1.bf16.msra.mxu1 %v1548_v19  ;;  %1091 = vmatprep.subr.bf16.mxu0 %v1553_v20 }
  0x57   : > { %1132 = vmatprep.subr.bf16.mxu1 %v1556_v21 }
  0x59   : > { %1092 = vmatpush1.bf16.msra.mxu0 %v1551_v22 }
  0x5a   : > { %1133 = vmatpush1.bf16.msra.mxu1 %v1554_v23  ;;  %1093 = vmatprep.subr.bf16.mxu0 %v1559_v24 }
  0x5b   : > { %1134 = vmatprep.subr.bf16.mxu1 %v1562_v25 }
  0x5d   : > { %1094 = vmatpush1.bf16.msra.mxu0 %v1557_v26  ;;  %v1661_v26 = vmov 1983009808  }
  0x5e   : > { %1135 = vmatpush1.bf16.msra.mxu1 %v1560_v27  ;;  %1095 = vmatprep.subr.bf16.mxu0 %v1565_v28  ;;  %v1176_v27 = vunpack.c.l.s4 %v1661_v26 }
  0x5f   : > { %1136 = vmatprep.subr.bf16.mxu1 %v1568_v29 }
  0x60   : > { %v1177_v28 = vunpack.c.0.s8 %v1176_v27 }
  0x61   : > { %1096 = vmatpush1.bf16.msra.mxu0 %v1563_v30 }
  0x62   : > { %1137 = vmatpush1.bf16.msra.mxu1 %v1566_v31  ;;  %1097 = vmatprep.subr.bf16.mxu0 %v1571_v32 }
  0x63   : > { %1138 = vmatprep.subr.bf16.mxu1 %v1574_v33  ;;  %v1180_v33 = vsub.s32 %v1177_v28, %v1746_v46 }
  0x65   : > { %1098 = vmatpush1.bf16.msra.mxu0 %v1569_v34 }
  0x66   : > { %1139 = vmatpush1.bf16.msra.mxu1 %v1572_v35  ;;  %1099 = vmatprep.subr.bf16.mxu0 %v1577_v36 }
  0x67   : > { %1140 = vmatprep.subr.bf16.mxu1 %v1580_v37 }
  0x69   : > { %1100 = vmatpush1.bf16.msra.mxu0 %v1575_v38 }
  0x6a   : > { %1141 = vmatpush1.bf16.msra.mxu1 %v1578_v39  ;;  %1101 = vmatprep.subr.bf16.mxu0 %v1583_v40 }
  0x6b   : > { %1142 = vmatprep.subr.bf16.mxu1 %v1586_v41 }
  0x6d   : > { %1102 = vmatpush1.bf16.msra.mxu0 %v1581_v42 }
  0x6e   : > { %1143 = vmatpush1.bf16.msra.mxu1 %v1584_v43  ;;  %1103 = vmatprep.subr.bf16.mxu0 %v1589_v44 }
  0x6f   : > { %1144 = vmatprep.subr.bf16.mxu1 %v1592_v45 }
  0x71   : > { %1104 = vmatpush2.bf16.msra.mxu0 %v1587_v47 }
  0x72   : > { %1145 = vmatpush2.bf16.msra.mxu1 %v1590_v48  ;;  %1105 = vmatprep.subr.bf16.mxu0 %v1595_v49 }
  0x73   : > { %1146 = vmatprep.subr.bf16.mxu1 %v1598_v50 }
  0x75   : > { %1106 = vmatpush2.bf16.msra.mxu0 %v1593_v51 }
  0x76   : > { %1147 = vmatpush2.bf16.msra.mxu1 %v1596_v52  ;;  %1107 = vmatprep.subr.bf16.mxu0 %v1601_v53 }
  0x77   : > { %1148 = vmatprep.subr.bf16.mxu1 %v1604_v54 }
  0x79   : > { %1108 = vmatpush2.bf16.msra.mxu0 %v1599_v55 }
  0x7a   : > { %1149 = vmatpush2.bf16.msra.mxu1 %v1602_v56  ;;  %1109 = vmatprep.subr.bf16.mxu0 %v1607_v57 }
  0x7b   : > { %1150 = vmatprep.subr.bf16.mxu1 %v1610_v58 }
  0x7d   : > { %1110 = vmatpush2.bf16.msra.mxu0 %v1605_v59 }
  0x7e   : > { %1151 = vmatpush2.bf16.msra.mxu1 %v1608_v60  ;;  %1111 = vmatprep.subr.bf16.mxu0 %v1613_v61 }
  0x7f   : > { %1152 = vmatprep.subr.bf16.mxu1 %v1616_v62 }
  0x81   : > { %1112 = vmatpush2.bf16.msra.mxu0 %v1611_v63 }
  0x82   : > { %1153 = vmatpush2.bf16.msra.mxu1 %v1614_v0  ;;  %1113 = vmatprep.subr.bf16.mxu0 %v1619_v1 }
  0x83   : > { %1154 = vmatprep.subr.bf16.mxu1 %v1622_v2 }
  0x85   : > { %1114 = vmatpush2.bf16.msra.mxu0 %v1617_v3 }
  0x86   : > { %1155 = vmatpush2.bf16.msra.mxu1 %v1620_v4  ;;  %1115 = vmatprep.subr.bf16.mxu0 %v1625_v5 }
  0x87   : > { %1156 = vmatprep.subr.bf16.mxu1 %v1628_v6 }
  0x89   : > { %1116 = vmatpush2.bf16.msra.mxu0 %v1623_v7 }
  0x8a   : > { %1157 = vmatpush2.bf16.msra.mxu1 %v1626_v8  ;;  %1117 = vmatprep.subr.bf16.mxu0 %v1631_v10 }
  0x8b   : > { %1158 = vmatprep.subr.bf16.mxu1 %v1634_v11 }
  0x8d   : > { %1118 = vmatpush2.bf16.msra.mxu0 %v1629_v12 }
  0x8e   : > { %1159 = vmatpush2.bf16.msra.mxu1 %v1632_v14 }
  0x90   : > { %1120 = vmatmul.mubr.bf16.vlgmr.msra.gmra.mxu0 %v1773_v9  ;;  %v1660_v9 = vmov 0.0  }
  0x91   : > { %1161 = vmatmul.mubr.bf16.vlgmr.msra.gmra.mxu1 %v1780_v13  ;;  %205 = vst.msk [vmem:[%s1853_s25] sm:$0xff] %vm1855_vm6, %v1660_v9 }
  0x98   : > { %v206_v43 = vld [vmem:[%s1853_s25] sm:$0xff] }
 0x110   : > { %v1039_v13 = vpop.f32.mrf.mxu0 }
 0x111   : > { %v1080_v16 = vpop.f32.mrf.mxu1 }
 0x112   : > { %v1081_v17 = vadd.f32 %v1080_v16, %v1039_v13  ;;  %v1041_v18 = vpop.f32.mrf.mxu0 }
 0x113   : > { %v1082_v19 = vpop.f32.mrf.mxu1 }
 0x114   : > { %v1083_v20 = vadd.f32 %v1082_v19, %v1041_v18  ;;  %v1043_v21 = vpop.f32.mrf.mxu0 }
 0x115   : > { %v1084_v22 = vpop.f32.mrf.mxu1 }
 0x116   : > { %v1173_v23 = vcombine.low %v1081_v17, %v1083_v20  ;;  %v1044_v24 = vpop.f32.mrf.mxu0 }
 0x117   : > { %v1085_v25 = vpop.f32.mrf.mxu1 }
 0x118   : > { %v1181_v41 = vrot.slane %v1173_v23, %v1180_v33 }
 0x150   : > { %v1121_v29 = vpop.f32.mrf.mxu0 }
 0x151   : > { %v1162_v30 = vpop.f32.mrf.mxu1 }
 0x152   : > { %v1123_v31 = vpop.f32.mrf.mxu0  ;;  %v1163_v34 = vadd.f32 %v1162_v30, %v1121_v29 }
 0x153   : > { %v1164_v32 = vpop.f32.mrf.mxu1 }
 0x154   : > { %v1165_v35 = vadd.f32 %v1164_v32, %v1123_v31  ;;  %v1125_v36 = vpop.f32.mrf.mxu0 }
 0x155   : > { %v1166_v37 = vpop.f32.mrf.mxu1 }
 0x156   : > { %v1174_v38 = vcombine.low %v1163_v34, %v1165_v35  ;;  %v1126_v39 = vpop.f32.mrf.mxu0 }
 0x157   : > { %v1167_v40 = vpop.f32.mrf.mxu1 }
 0x158   : > { %v1188_v42 = vrot.slane %v1174_v38, %v1180_v33 }
 0x15a   : > { %v1189_v44 = vcombine.low %v1181_v41, %v1188_v42 }
 0x15c   : > { %v1191_v45 = vadd.f32 %v1189_v44, %v206_v43 }
 0x15e   : > { %1199 = vst.msk [vmem:[%s1853_s25] sm:$0xff] %vm1855_vm6, %v1191_v45 }
 0x15f PF: > { %s12_s11 = sadd.s32 1, %s1657_s11   ;;  %s1881_s9 = smov %s1653_s10 }
 0x160   : > { %p9_p7 = scmp.ge.s32.totalorder %s12_s11, 4   ;;  %s1882_s10 = smov %s1884_s12 }
 0x162   :  { %11 = sbr.rel (!%p9_p7) target bundleno = 2 (0x2), region = 65 }

// kernel: _forward_impl.3
= control target key start
LH: loop header
LB: loop body
LE: loop exit
PB: predicated region body
PF: predicated region fallthrough
CT: control target
= control target key end

     0   :  { %vm53_vm0 = vcmask 1044480   ;;  %vm49_vm1 = vcmask 80896   ;;  %v622_v1 = vmov 0   ;;  %v157_v33 = vlaneseq  ;;  %s777_s2 = inlined_call_operand.vmem [shape: bf16[10,400], index: 2, kind: input, shape index: {}]   ;;  %s778_s1 = inlined_call_operand.vmem [shape: bf16[2,10], index: 1, kind: input, shape index: {}]   ;;  %s779_s4 = inlined_call_operand.vmem [shape: bf16[400,128], index: 4, kind: input, shape index: {}]   ;;  %s780_s3 = inlined_call_operand.vmem [shape: f32[1,400], index: 3, kind: input, shape index: {}]   ;;  %s781_s0 = inlined_call_operand.vmem [shape: f32[2,2,400], index: 0, kind: input, shape index: {}]   ;;  %s782_s5 = inlined_call_operand.vmem [shape: f32[1,128], index: 5, kind: input, shape index: {}]   ;;  %s783_s6 = inlined_call_operand.vmem [shape: f32[2,128], index: 6, kind: output, shape index: {}]  }
   0x1   :  { %v591_v0 = vld [vmem:[%s777_s2 + $0x4] ss:$16 sps:$4 sm:$0x1f]   ;;  %98 = vmatprep.mubr.bf16.mxu0 %v622_v1  ;;  %139 = vmatprep.mubr.bf16.mxu1 %v622_v1  ;;  %v593_v2 = vld [vmem:[%s777_s2 + $0xc] ss:$16 sps:$4 sm:$0x1f]  }
   0x2   :  { %536 = vmatprep.subr.msk.bf16.mxu0 %vm53_vm0, %v591_v0  ;;  %v595_v3 = vld [vmem:[%s777_s2] ss:$16 sps:$4 sm:$0x1f]   ;;  %v596_v4 = vld [vmem:[%s777_s2 + $0x8] ss:$16 sps:$4 sm:$0x1f]   ;;  %538 = vmatprep.subr.msk.bf16.mxu1 %vm53_vm0, %v593_v2 }
   0x3   :  { %v28_v5 = vld [vmem:[%s778_s1] sm:$0x1]  ;;  %v55_v6 = vsel %vm53_vm0, %v595_v3, 0  ;;  %v61_v7 = vsel %vm53_vm0, %v596_v4, 0  ;;  %v597_v8 = vld [vmem:[%s779_s4 + $0xb8] sm:$0xff]   ;;  %v600_v11 = vld [vmem:[%s779_s4 + $0xb0] sm:$0xff]  }
   0x4   :  { %v598_v9 = vld [vmem:[%s779_s4 + $0x78] sm:$0xff]   ;;  %81 = vmatpush1.bf16.msra.mxu0 %v55_v6  ;;  %122 = vmatpush1.bf16.msra.mxu1 %v61_v7  ;;  %v601_v12 = vld [vmem:[%s779_s4 + $0x70] sm:$0xff]   ;;  %v603_v14 = vld [vmem:[%s779_s4 + $0xa8] sm:$0xff]   ;;  %v158_v34 = vshrl.u32 %v157_v33, 7  ;;  %v623_v40 = vmov 1983009808  }
   0x5   :  { %486 = vmatprep.subr.bf16.mxu1 %v622_v1  ;;  %567 = vmatprep.subr.bf16.mxu0 %v598_v9  ;;  %v599_v10 = vld [vmem:[%s779_s4 + $0x38] sm:$0xff]   ;;  %v602_v13 = vld [vmem:[%s779_s4 + $0x30] sm:$0xff]   ;;  %v604_v15 = vld [vmem:[%s779_s4 + $0x68] sm:$0xff]   ;;  %v155_v41 = vunpack.c.l.s4 %v623_v40  ;;  %vm442_vm2 = vcmask 130048  }
   0x6   :  { %v605_v16 = vld [vmem:[%s779_s4 + $0x28] sm:$0xff]   ;;  %v606_v17 = vld [vmem:[%s779_s4 + $0xa0] sm:$0xff]   ;;  %v609_v20 = vld [vmem:[%s779_s4 + $0x98] sm:$0xff]   ;;  %v175_v35 = vsub.s32 0, %v158_v34  ;;  %v179_v36 = vsub.s32 1, %v158_v34  ;;  %v183_v37 = vsub.s32 2, %v158_v34 }
   0x7   :  { %537 = vmatmul.mubr.msk.bf16.vlgmr.msra.gmra.mxu0 %vm49_vm1, %v28_v5  ;;  %539 = vmatmul.mubr.msk.bf16.vlgmr.msra.gmra.mxu1 %vm49_vm1, %v28_v5  ;;  %v607_v18 = vld [vmem:[%s779_s4 + $0x60] sm:$0xff]   ;;  %v610_v21 = vld [vmem:[%s779_s4 + $0x58] sm:$0xff]   ;;  %v612_v23 = vld [vmem:[%s779_s4 + $0x90] sm:$0xff]   ;;  %v187_v38 = vsub.s32 3, %v158_v34  ;;  %v156_v46 = vunpack.c.0.s8 %v155_v41 }
   0x8   :  { %487 = vmatpush1.bf16.msra.mxu1 %v597_v8  ;;  %568 = vmatpush3.bf16.msra.mxu0 %v599_v10  ;;  %v608_v19 = vld [vmem:[%s779_s4 + $0x20] sm:$0xff]   ;;  %v611_v22 = vld [vmem:[%s779_s4 + $0x18] sm:$0xff]   ;;  %v613_v24 = vld [vmem:[%s779_s4 + $0x50] sm:$0xff]  }
   0x9   :  { %488 = vmatprep.subr.bf16.mxu1 %v622_v1  ;;  %569 = vmatprep.subr.bf16.mxu0 %v601_v12  ;;  %v614_v25 = vld [vmem:[%s779_s4 + $0x10] sm:$0xff]   ;;  %v615_v26 = vld [vmem:[%s779_s4 + $0x88] sm:$0xff]   ;;  %v619_v29 = vld [vmem:[%s779_s4 + $0x40] sm:$0xff]   ;;  %v159_v51 = vsub.s32 %v156_v46, %v158_v34 }
   0xa   :  { %v616_v27 = vld [vmem:[%s779_s4 + $0x48] sm:$0xff]   ;;  %v618_v30 = vld [vmem:[%s779_s4 + $0x80] sm:$0xff]  }
   0xb   :  { %v617_v28 = vld [vmem:[%s779_s4 + $0x8] sm:$0xff]   ;;  %v620_v31 = vld [vmem:[%s779_s4] sm:$0xff]  }
   0xc   :  { %489 = vmatpush1.bf16.msra.mxu1 %v600_v11  ;;  %570 = vmatpush3.bf16.msra.mxu0 %v602_v13  ;;  %v621_v32 = vld [vmem:[%s779_s4 + $0xc0] sm:$0xff]   ;;  %v531_v54 = vld [vmem:[%s781_s0 + $0x8] sm:$0xff] }
   0xd   :  { %490 = vmatprep.subr.bf16.mxu1 %v622_v1  ;;  %571 = vmatprep.subr.bf16.mxu0 %v604_v15  ;;  %v171_v39 = vld [vmem:[%s780_s3] sm:$0xf] }
   0xe   :  { %v176_v42 = vrot.slane %v171_v39, %v175_v35  ;;  %v180_v43 = vrot.slane %v171_v39, %v179_v36  ;;  %v184_v44 = vrot.slane %v171_v39, %v183_v37  ;;  %v188_v45 = vrot.slane %v171_v39, %v187_v38  ;;  %v24_v53 = vld [vmem:[%s781_s0] sm:$0xff] }
   0xf   :  { %v27_v63 = vadd.f32 %v531_v54, %v24_v53 }
  0x10   :  { %491 = vmatpush1.bf16.msra.mxu1 %v603_v14  ;;  %572 = vmatpush3.bf16.msra.mxu0 %v605_v16  ;;  %v189_v47 = vcombine.low %v176_v42, %v180_v43  ;;  %v190_v48 = vcombine.low %v184_v44, %v188_v45 }
  0x11   :  { %492 = vmatprep.subr.bf16.mxu1 %v622_v1  ;;  %573 = vmatprep.subr.bf16.mxu0 %v607_v18 }
  0x12   :  { %v197_v58 = vrot.slane %v189_v47, %v159_v51  ;;  %v204_v59 = vrot.slane %v190_v48, %v159_v51 }
  0x14   :  { %493 = vmatpush1.bf16.msra.mxu1 %v606_v17  ;;  %574 = vmatpush3.bf16.msra.mxu0 %v608_v19  ;;  %v205_v4 = vcombine.low %v197_v58, %v204_v59  ;;  %v540_v19 = vld [vmem:[%s782_s5] ss:$0 sm:$0xff] }
  0x15   :  { %494 = vmatprep.subr.bf16.mxu1 %v622_v1  ;;  %575 = vmatprep.subr.bf16.mxu0 %v610_v21 }
  0x18   :  { %495 = vmatpush1.bf16.msra.mxu1 %v609_v20  ;;  %576 = vmatpush3.bf16.msra.mxu0 %v611_v22 }
  0x19   :  { %496 = vmatprep.subr.bf16.mxu1 %v622_v1  ;;  %577 = vmatprep.subr.bf16.mxu0 %v613_v24 }
  0x1c   :  { %497 = vmatpush1.bf16.msra.mxu1 %v612_v23  ;;  %578 = vmatpush3.bf16.msra.mxu0 %v614_v25 }
  0x1d   :  { %498 = vmatprep.subr.bf16.mxu1 %v622_v1  ;;  %579 = vmatprep.subr.bf16.mxu0 %v616_v27 }
  0x20   :  { %499 = vmatpush1.bf16.msra.mxu1 %v615_v26  ;;  %580 = vmatpush3.bf16.msra.mxu0 %v617_v28 }
  0x21   :  { %500 = vmatprep.subr.bf16.mxu1 %v622_v1  ;;  %581 = vmatprep.subr.bf16.mxu0 %v619_v29 }
  0x24   :  { %501 = vmatpush1.bf16.msra.mxu1 %v618_v30  ;;  %582 = vmatpush3.bf16.msra.mxu0 %v620_v31 }
  0x25   :  { %516 = vmatprep.subr.bf16.mxu1 %v622_v1 }
  0x28   :  { %517 = vmatpush2.bf16.msra.mxu1 %v621_v32 }
  0xc7   :  { %v100_v49 = vpop.f32.mrf.mxu0  ;;  %v141_v50 = vpop.f32.mrf.mxu1 }
  0xc9   :  { %v102_v52 = vpop.f32.mrf.mxu0  ;;  %v143_v55 = vpop.f32.mrf.mxu1 }
  0xca   :  { %v152_v56 = vcombine.low %v100_v49, %v102_v52  ;;  %v153_v57 = vcombine.low %v141_v50, %v143_v55 }
  0xcb   :  { %v104_v60 = vpop.f32.mrf.mxu0  ;;  %v145_v61 = vpop.f32.mrf.mxu1 }
  0xcc   :  { %v160_v62 = vrot.slane %v152_v56, %v159_v51  ;;  %v167_v0 = vrot.slane %v153_v57, %v159_v51 }
  0xcd   :  { %v105_v1 = vpop.f32.mrf.mxu0  ;;  %v146_v2 = vpop.f32.mrf.mxu1 }
  0xce   :  { %v168_v3 = vcombine.low %v160_v62, %v167_v0 }
  0xd0   :  { %v170_v5 = vadd.f32 %v168_v3, %v27_v63 }
  0xd2   :  { %v207_v6 = vadd.f32 %v205_v4, %v170_v5 }
  0xd4   :  { %v208_v7 = vmax.f32 %v207_v6, 0.0 }
  0xd6   :  { %v210_v8 = vcombine.high %v208_v7, %v208_v7  ;;  %v217_v9 = vrot.slane %v208_v7, %v159_v51 }
  0xd8   :  { %v225_v10 = vcombine.high %v217_v9, %v217_v9  ;;  %v224_v11 = vrot.slane %v210_v8, %v159_v51  ;;  %v231_v14 = vpack.c.bf16 %v217_v9, %v217_v9 }
  0xda   :  { %v232_v12 = vpack.c.bf16 %v225_v10, %v225_v10  ;;  %v226_v13 = vcombine.high %v224_v11, %v224_v11  ;;  %v233_v16 = vpack.c.bf16 %v224_v11, %v224_v11 }
  0xdc   :  { %478 = vmatprep.mubr.bf16.mxu0 %v232_v12  ;;  %v234_v15 = vpack.c.bf16 %v226_v13, %v226_v13 }
  0xdd   :  { %479 = vmatmul.mubr.bf16.vlgmr.msra.gmra.mxu0 %v231_v14 }
  0xde   :  { %566 = vmatprep.mubr.msk.bf16.mxu1 %vm442_vm2, %v234_v15 }
  0xdf   :  { %519 = vmatmul.mubr.bf16.vlgmr.msra.gmra.mxu1 %v233_v16 }
 0x19d   :  { %v583_v17 = vpop.f32.mrf.mxu0 }
 0x19f   :  { %v584_v18 = vpop.f32.mrf.mxu0  ;;  %v520_v20 = vpop.f32.mrf.mxu1 }
 0x1a0   :  { %v585_v21 = vadd.f32 %v584_v18, %v583_v17 }
 0x1a1   :  { %v586_v22 = vpop.f32.mrf.mxu0  ;;  %v522_v23 = vpop.f32.mrf.mxu1 }
 0x1a2   :  { %v481_v24 = vadd.f32 %v585_v21, %v540_v19 }
 0x1a3   :  { %v587_v25 = vpop.f32.mrf.mxu0  ;;  %v523_v26 = vpop.f32.mrf.mxu1 }
 0x1a4   :  { %v521_v27 = vadd.f32 %v520_v20, %v481_v24 }
 0x1a5   :  { %v524_v28 = vpop.f32.mrf.mxu1 }
 0x1a6   :  { %526 = vst [vmem:[%s783_s6] sm:$0x3] %v521_v27 }

</bundles_post_ra>
